<compile_context>
chip_gen: v7x
topology: tpu7x:2x2x1
jax: 0.10.0
libtpu: 0.0.40
codegen_flags: <defaults>
</compile_context>

<pallas_src>
import functools
import math

import numpy as np
import jax
import jax.numpy as jnp
from jax import lax
from jax.experimental import pallas as pl
from jax.experimental.pallas import tpu as pltpu


# ----------------------------------------------------------------------------
# Helpers
# ----------------------------------------------------------------------------
def _reduced_w(W: int, kernel: int) -> int:
    # Exact PyTorch semantics: (W+1)//2 only for kernel==2 with odd W,
    # otherwise W // kernel (tail elements silently dropped).
    return (W + 1) // 2 if (kernel == 2 and W % 2 == 1) else W // kernel


def _sublane(dtype) -> int:
    # Rows per packed sublane: 8 for 32-bit, 16 for 16-bit, 32 for 8-bit dtypes.
    return {4: 8, 2: 16, 1: 32}.get(jnp.dtype(dtype).itemsize, 8)


@functools.lru_cache(maxsize=None)
def _vmem_capacity() -> int:
    """Physical VMEM per TensorCore (generation-aware budgets), with fallback."""
    try:
        info = pltpu.get_tpu_info()
        for name in ("vmem_capacity_bytes", "vmem_size_bytes", "vmem_bytes"):
            v = getattr(info, name, None)
            if v:
                return int(v)
    except Exception:
        pass
    return 64 << 20   # conservative: v7x per-core VMEM


@functools.lru_cache(maxsize=None)
def _pool_matrix(W, kernel, G, dtype_name):
    """Block-diagonal averaging matrix (G*W, G*reduced_W) for the grouped path."""
    rW = _reduced_w(W, kernel)
    idx = np.arange(W)
    col = idx // kernel
    valid = col < rW
    # The last kernel==2 / odd-W window averages a single element (count 1).
    counts = np.minimum((col + 1) * kernel, W) - col * kernel
    base = np.zeros((W, rW), dtype=np.float32)
    base[idx[valid], col[valid]] = 1.0 / counts[valid]
    if G > 1:
        base = np.kron(np.eye(G, dtype=np.float32), base)
    return jnp.asarray(base, dtype=dtype_name)


@functools.lru_cache(maxsize=None)
def _band_matrix(kernel, Nb, dtype_name):
    """Averaging matrix (Nb*kernel, Nb) for one output-column block (banded path)."""
    Kb = Nb * kernel
    rows = np.arange(Kb)
    P = np.zeros((Kb, Nb), dtype=np.float32)
    P[rows, rows // kernel] = 1.0 / kernel
    return jnp.asarray(P, dtype=dtype_name)


def _choose_group(M, W, rW, p_itemsize, p_cap=4 << 20):
    """Rows grouped per wide row (grouped path).

    Preference order:
      (a) divisor of M making G*rW an exact multiple of 128 (lane-dense, no pad)
      (b) any divisor of M with G*rW >= 128 (no pad, slightly masked tail lanes)
      (c) pad M: smallest G with G*rW an exact multiple of 128, then >= 128
      (d) largest fitting divisor below the 128-lane target.
    """
    if rW >= 128 or M <= 1:
        return 1
    g0 = 128 // math.gcd(rW, 128)          # smallest G with (G*rW) % 128 == 0

    def p_ok(g):
        return (g * W) * (g * rW) * p_itemsize <= p_cap

    for mult in (1, 2, 3, 4):                                   # (a)
        g = g0 * mult
        if g <= M and M % g == 0 and p_ok(g):
            return g
    target = -(-128 // rW)
    for g in range(target, min(M, 4 * target) + 1):             # (b)
        if M % g == 0 and p_ok(g):
            return g
    if p_ok(g0):                                                # (c)
        return g0
    if p_ok(target):
        return target
    for g in range(min(target, M), 0, -1):                      # (d)
        if M % g == 0 and p_ok(g):
            return g
    return 1


def _choose_tm(Mrows, in_row_bytes, out_row_bytes, resident_bytes, sublane,
               vmem_cap, col_tiles=1):
    """Row-tile size: fits VMEM, yields >= ~4 grid steps, even near-equal tiles."""
    # Generation-aware tile budget (v7x 64 MiB VMEM -> ~12.8 MiB of tiles).
    tile_budget = max(2 << 20, min(16 << 20, vmem_cap // 5) - resident_bytes)
    per_row = 2 * (in_row_bytes + out_row_bytes)        # double-buffered in+out
    tm_cap = max(sublane, min(2048, tile_budget // max(per_row, 1)))
    min_steps = 4                                       # DMA / MXU / writeback overlap
    want_rows = max(1, -(-min_steps // max(col_tiles, 1)))
    n = max(want_rows, -(-Mrows // tm_cap))
    if n > 1 and n % 2:
        n += 1                     # even tile count: balanced across v7x's 2 TCs
    n = min(n, max(1, -(-Mrows // sublane)))
    tm = -(-Mrows // n)
    if tm >= Mrows:
        return Mrows               # single tile covering all rows (tiny inputs)
    tm = max(sublane, ((tm + sublane - 1) // sublane) * sublane)
    return min(tm, Mrows)


def _vmem_limit(needed, vmem_cap):
    return int(min(max(needed, 16 << 20), (vmem_cap * 3) // 4))


# ----------------------------------------------------------------------------
# Kernels
# ----------------------------------------------------------------------------
def _grouped_kernel(x_ref, p_ref, o_ref):
    # (tm, G*W) @ (G*W, G*reduced_W), f32 accumulation on the MXU.
    o_ref[...] = jnp.dot(x_ref[...], p_ref[...],
                         preferred_element_type=jnp.float32).astype(o_ref.dtype)


def _banded_kernel(x_ref, p_ref, o_ref, *, w_total, kb, mask_tail,
                   odd_fix, fix_scale, last_col_local, n_col_blocks):
    j = pl.program_id(1)
    x = x_ref[...]
    if mask_tail:
        # The last column block may extend past W; Pallas clamps the DMA and the
        # tail of the VMEM buffer is stale -> zero it so it can't contaminate
        # the dot product.
        kidx = lax.broadcasted_iota(jnp.int32, x.shape, 1)
        x = jnp.where(kidx < (w_total - j * kb), x, jnp.zeros_like(x))
    acc = jnp.dot(x, p_ref[...], preferred_element_type=jnp.float32)
    if odd_fix:
        # kernel==2 with odd W: the last window holds a single element, so its
        # mean is x[..., W-1] (weight 1), not x[..., W-1] / 2.
        cidx = lax.broadcasted_iota(jnp.int32, acc.shape, 1)
        sel = (cidx == last_col_local) & (j == n_col_blocks - 1)
        acc = jnp.where(sel, acc * fix_scale, acc)
    o_ref[...] = acc.astype(o_ref.dtype)


# ----------------------------------------------------------------------------
# Single-buffered constant-operand support (probed once, safe fallback)
# ----------------------------------------------------------------------------
_SINGLE_BUFFER_P = {"supported": None}


def _p_spec(block_shape, index_map, single_buf):
    if single_buf and hasattr(pl, "Buffered"):
        # Grid-constant operand: one resident copy instead of a double buffer.
        return pl.BlockSpec(block_shape, index_map, pipeline_mode=pl.Buffered(1))
    return pl.BlockSpec(block_shape, index_map)


def _call_with_const_operand(builder, args):
    """Run builder(single_buffered_P)(*args); probe pl.Buffered(1) support once."""
    state = _SINGLE_BUFFER_P["supported"]
    if state is None:
        try:
            out = builder(True)(*args)
            jax.block_until_ready(out)
            _SINGLE_BUFFER_P["supported"] = True
            return out
        except Exception:
            _SINGLE_BUFFER_P["supported"] = False
            return builder(False)(*args)
    return builder(state)(*args)


# ----------------------------------------------------------------------------
# Execution paths
# ----------------------------------------------------------------------------
def _grouped_pool(x2, W, rW, kernel, vmem_cap):
    M = x2.shape[0]
    dtype = x2.dtype
    itemsize = jnp.dtype(dtype).itemsize
    sub = _sublane(dtype)

    G = _choose_group(M, W, rW, itemsize)
    Mp = -(-M // G) * G
    if Mp != M:
        # No divisor of M gives lane-dense output tiles -> zero-pad the row dim;
        # pad rows are sliced off below.
        x2 = jnp.pad(x2, ((0, Mp - M), (0, 0)))
    Mg = Mp // G
    Kw, Nw = G * W, G * rW

    P = _pool_matrix(W, kernel, G, jnp.dtype(dtype).name)
    p_bytes = Kw * Nw * itemsize
    # Budget P at 2x so the double-buffered fallback path also fits.
    tm = _choose_tm(Mg, Kw * itemsize, Nw * itemsize, 2 * p_bytes, sub, vmem_cap)
    grid = (pl.cdiv(Mg, tm),)
    needed = 2 * tm * (Kw + Nw) * itemsize + 2 * p_bytes + (2 << 20)
    cost = pl.CostEstimate(flops=int(2 * Mg * Kw * Nw), transcendentals=0,
                           bytes_accessed=int(Mg * (Kw + Nw) * itemsize + p_bytes))
    xg = x2.reshape(Mg, Kw)

    def builder(single_buf):
        return pl.pallas_call(
            _grouped_kernel,
            out_shape=jax.ShapeDtypeStruct((Mg, Nw), dtype),
            grid=grid,
            in_specs=[pl.BlockSpec((tm, Kw), lambda i: (i, 0)),
                      _p_spec((Kw, Nw), lambda i: (0, 0), single_buf)],
            out_specs=pl.BlockSpec((tm, Nw), lambda i: (i, 0)),
            compiler_params=pltpu.CompilerParams(
                dimension_semantics=("parallel",),
                vmem_limit_bytes=_vmem_limit(needed, vmem_cap)),
            cost_estimate=cost,
        )

    outg = _call_with_const_operand(builder, (xg, P))
    return outg.reshape(Mp, rW)[:M]


def _banded_pool(x2, W, rW, kernel, vmem_cap):
    M = x2.shape[0]
    dtype = x2.dtype
    itemsize = jnp.dtype(dtype).itemsize
    sub = _sublane(dtype)

    Nb = 128                    # lane-dense output blocks, mem-bound everywhere
    Kb = Nb * kernel
    nc = -(-rW // Nb)
    P = _band_matrix(kernel, Nb, jnp.dtype(dtype).name)
    p_bytes = Kb * Nb * itemsize

    tm = _choose_tm(M, Kb * itemsize, Nb * itemsize, 2 * p_bytes, sub, vmem_cap,
                    col_tiles=nc)
    grid = (pl.cdiv(M, tm), nc)
    mask_tail = nc * Kb > W
    odd_fix = (kernel == 2 and W % 2 == 1)
    kern = functools.partial(
        _banded_kernel, w_total=W, kb=Kb, mask_tail=mask_tail, odd_fix=odd_fix,
        fix_scale=float(kernel), last_col_local=(rW - 1) - (nc - 1) * Nb,
        n_col_blocks=nc)
    needed = 2 * tm * (Kb + Nb) * itemsize + 2 * p_bytes + (2 << 20)
    cost = pl.CostEstimate(flops=int(2 * M * Kb * nc * Nb), transcendentals=0,
                           bytes_accessed=int(M * (W + rW) * itemsize + p_bytes))

    def builder(single_buf):
        return pl.pallas_call(
            kern,
            out_shape=jax.ShapeDtypeStruct((M, rW), dtype),
            grid=grid,
            in_specs=[pl.BlockSpec((tm, Kb), lambda i, j: (i, j)),
                      _p_spec((Kb, Nb), lambda i, j: (0, 0), single_buf)],
            out_specs=pl.BlockSpec((tm, Nb), lambda i, j: (i, j)),
            compiler_params=pltpu.CompilerParams(
                dimension_semantics=("parallel", "parallel"),
                vmem_limit_bytes=_vmem_limit(needed, vmem_cap)),
            cost_estimate=cost,
        )

    return _call_with_const_operand(builder, (x2, P))


# ----------------------------------------------------------------------------
# Public wrapper (forward pass of VNMeanPool_local)
# ----------------------------------------------------------------------------
def vn_mean_pool_local(x: jnp.ndarray, kernel: int = 2) -> jnp.ndarray:
    """Pallas implementation of VNMeanPool_local.forward (3-D / 4-D input)."""
    orig_shape = x.shape
    W = int(orig_shape[-1])
    rW = _reduced_w(W, kernel)
    if not jnp.issubdtype(x.dtype, jnp.floating):
        # torch .mean on integer tensors is unsupported; promote to float32.
        x = x.astype(jnp.float32)
    if rW <= 0:
        # kernel > W (and not the odd-W kernel==2 case): width-0 output,
        # matching the PyTorch loop that never executes.
        return jnp.zeros((*orig_shape[:-1], 0), dtype=x.dtype)

    M = int(np.prod(orig_shape[:-1])) if len(orig_shape) > 1 else 1
    x2 = x.reshape(M, W)
    vmem_cap = _vmem_capacity()
    if rW >= 128:
        out2 = _banded_pool(x2, W, rW, kernel, vmem_cap)
    else:
        out2 = _grouped_pool(x2, W, rW, kernel, vmem_cap)
    return out2.reshape(*orig_shape[:-1], rW)


# ----------------------------------------------------------------------------
# Reference + tests
# ----------------------------------------------------------------------------
def _reference(x: jnp.ndarray, kernel: int = 2) -> jnp.ndarray:
    # Pure-JAX reference mirroring the PyTorch loop exactly.
    W = x.shape[-1]
    rW = _reduced_w(W, kernel)
    cols = [jnp.mean(x[..., i * kernel:(i + 1) * kernel], axis=-1)
            for i in range(rW)]
    return jnp.stack(cols, axis=-1)


if __name__ == "__main__":
    key = jax.random.PRNGKey(0)
    k1, k2, k3, k4, k5, k6, k7 = jax.random.split(key, 7)

    # 4-D VN layout (B, C, N, W): grouped path, exact divisor, lane-dense tiles.
    x4 = jax.random.normal(k1, (2, 4, 16, 16), dtype=jnp.float32)
    out4 = jax.block_until_ready(vn_mean_pool_local(x4, kernel=2))
    assert out4.shape == (2, 4, 16, 8), out4.shape
    np.testing.assert_allclose(np.asarray(out4), np.asarray(_reference(x4)),
                               rtol=1e-5, atol=1e-5)

    # 3-D, odd W ((W+1)//2 branch); M has no lane-dense divisor -> pad-M path.
    x3 = jax.random.normal(k2, (2, 8, 7), dtype=jnp.float32)
    out3 = jax.block_until_ready(vn_mean_pool_local(x3, kernel=2))
    assert out3.shape == (2, 8, 4), out3.shape
    np.testing.assert_allclose(np.asarray(out3), np.asarray(_reference(x3)),
                               rtol=1e-5, atol=1e-5)

    # Larger M: multi-tile grid (>= 4 even, near-equal row tiles -> pipelined).
    xb = jax.random.normal(k3, (2, 8, 1024, 16), dtype=jnp.float32)
    outb = jax.block_until_ready(vn_mean_pool_local(xb, kernel=2))
    assert outb.shape == (2, 8, 1024, 8), outb.shape
    np.testing.assert_allclose(np.asarray(outb), np.asarray(_reference(xb)),
                               rtol=1e-5, atol=1e-5)

    # bf16 input: 16-row sublane alignment, bf16 P with f32 accumulation.
    xh = jax.random.normal(k4, (3, 4, 50, 16), dtype=jnp.bfloat16)
    outh = jax.block_until_ready(vn_mean_pool_local(xh, kernel=2))
    assert outh.shape == (3, 4, 50, 8), outh.shape
    np.testing.assert_allclose(np.asarray(outh, dtype=np.float32),
                               np.asarray(_reference(xh.astype(jnp.float32))),
                               rtol=2e-2, atol=2e-2)

    # Wide W (reduced_W >= 128): banded path, 2-D grid, W an exact band multiple.
    xw = jax.random.normal(k5, (2, 4, 8, 512), dtype=jnp.float32)
    outw = jax.block_until_ready(vn_mean_pool_local(xw, kernel=2))
    assert outw.shape == (2, 4, 8, 256), outw.shape
    np.testing.assert_allclose(np.asarray(outw), np.asarray(_reference(xw)),
                               rtol=1e-5, atol=1e-5)

    # Wide odd W: banded path with tail masking + single-element last window fix.
    xo = jax.random.normal(k6, (2, 3, 32, 301), dtype=jnp.float32)
    outo = jax.block_until_ready(vn_mean_pool_local(xo, kernel=2))
    assert outo.shape == (2, 3, 32, 151), outo.shape
    np.testing.assert_allclose(np.asarray(outo), np.asarray(_reference(xo)),
                               rtol=1e-5, atol=1e-5)

    # Integer input: promoted to float32 (torch mean on ints is unsupported).
    xi = jax.random.randint(k7, (2, 4, 8, 16), -5, 5, dtype=jnp.int32)
    outi = jax.block_until_ready(vn_mean_pool_local(xi, kernel=2))
    assert outi.shape == (2, 4, 8, 8) and outi.dtype == jnp.float32
    np.testing.assert_allclose(np.asarray(outi),
                               np.asarray(_reference(xi.astype(jnp.float32))),
                               rtol=1e-5, atol=1e-5)

    print("KERNEL_OK")
</pallas_src>

<mosaic_0001>
module attributes {stable_mosaic.version = 11 : i64} {
  func.func @_grouped_kernel(%arg0: i32, %arg1: memref<8x256xf32, #tpu.memory_space<vmem>>, %arg2: memref<256x128xf32, #tpu.memory_space<vmem>>, %arg3: memref<8x128xf32, #tpu.memory_space<vmem>>) attributes {dimension_semantics = [#tpu.dimension_semantics<parallel>], iteration_bounds = array<i64: 1>, scalar_prefetch = 0 : i64, scratch_operands = 0 : i64, tpu.core_type = #tpu.core_type<tc>, window_params = [{transform_indices = @transform_0, window_bounds = array<i64: 8, 256>}, {pipeline_mode = #tpu.pipeline_mode<synchronous>, transform_indices = @transform_1, window_bounds = array<i64: 256, 128>}, {transform_indices = @transform_2, window_bounds = array<i64: 8, 128>}]} {
    %c0 = arith.constant 0 : index
    %c0_0 = arith.constant 0 : index
    %0 = vector.load %arg1[%c0, %c0_0] : memref<8x256xf32, #tpu.memory_space<vmem>>, vector<8x256xf32>
    %c0_1 = arith.constant 0 : index
    %c0_2 = arith.constant 0 : index
    %1 = vector.load %arg2[%c0_1, %c0_2] : memref<256x128xf32, #tpu.memory_space<vmem>>, vector<256x128xf32>
    %cst = arith.constant dense<0.000000e+00> : vector<8x128xf32>
    %2 = tpu.matmul %0, %1, %cst {dimension_numbers = #tpu.dot_dimension_numbers<[1], [0], [0], [1], [0, 0, 1, 1], [], []>} : vector<8x256xf32>, vector<256x128xf32>, vector<8x128xf32> -> vector<8x128xf32>
    %c0_3 = arith.constant 0 : index
    %c0_4 = arith.constant 0 : index
    %3 = vector.load %arg3[%c0_3, %c0_4] : memref<8x128xf32, #tpu.memory_space<vmem>>, vector<8x128xf32>
    tpu.vector_store %arg3[%c0_3, %c0_4], %2 {strides = array<i32>} : memref<8x128xf32, #tpu.memory_space<vmem>>, vector<8x128xf32>,
    return
  }
  func.func @transform_0(%arg0: i32) -> (i32, i32) {
    %c0_i32 = arith.constant 0 : i32
    %c0_i32_0 = arith.constant 0 : i32
    return %arg0, %c0_i32 : i32, i32
  }
  func.func @transform_1(%arg0: i32) -> (i32, i32) {
    %c0_i32 = arith.constant 0 : i32
    %c0_i32_0 = arith.constant 0 : i32
    %c0_i32_1 = arith.constant 0 : i32
    return %c0_i32, %c0_i32_0 : i32, i32
  }
  func.func @transform_2(%arg0: i32) -> (i32, i32) {
    %c0_i32 = arith.constant 0 : i32
    %c0_i32_0 = arith.constant 0 : i32
    return %arg0, %c0_i32 : i32, i32
  }
}

module attributes {stable_mosaic.version = 11 : i64} {
  func.func @_grouped_kernel(%arg0: i32, %arg1: memref<8x256xf32, #tpu.memory_space<vmem>>, %arg2: memref<256x128xf32, #tpu.memory_space<vmem>>, %arg3: memref<8x128xf32, #tpu.memory_space<vmem>>) attributes {dimension_semantics = [#tpu.dimension_semantics<parallel>], iteration_bounds = array<i64: 1>, scalar_prefetch = 0 : i64, scratch_operands = 0 : i64, tpu.core_type = #tpu.core_type<tc>, window_params = [{transform_indices = @transform_0, window_bounds = array<i64: 8, 256>}, {pipeline_mode = #tpu.pipeline_mode<synchronous>, transform_indices = @transform_1, window_bounds = array<i64: 256, 128>}, {transform_indices = @transform_2, window_bounds = array<i64: 8, 128>}]} {
    %c0 = arith.constant 0 : index
    %c0_0 = arith.constant 0 : index
    %0 = vector.load %arg1[%c0, %c0_0] : memref<8x256xf32, #tpu.memory_space<vmem>>, vector<8x256xf32>
    %c0_1 = arith.constant 0 : index
    %c0_2 = arith.constant 0 : index
    %1 = vector.load %arg2[%c0_1, %c0_2] : memref<256x128xf32, #tpu.memory_space<vmem>>, vector<256x128xf32>
    %cst = arith.constant dense<0.000000e+00> : vector<8x128xf32>
    %2 = tpu.matmul %0, %1, %cst {dimension_numbers = #tpu.dot_dimension_numbers<[1], [0], [0], [1], [0, 0, 1, 1], [], []>} : vector<8x256xf32>, vector<256x128xf32>, vector<8x128xf32> -> vector<8x128xf32>
    %c0_3 = arith.constant 0 : index
    %c0_4 = arith.constant 0 : index
    %3 = vector.load %arg3[%c0_3, %c0_4] : memref<8x128xf32, #tpu.memory_space<vmem>>, vector<8x128xf32>
    tpu.vector_store %arg3[%c0_3, %c0_4], %2 {strides = array<i32>} : memref<8x128xf32, #tpu.memory_space<vmem>>, vector<8x128xf32>,
    return
  }
  func.func @transform_0(%arg0: i32) -> (i32, i32) {
    %c0_i32 = arith.constant 0 : i32
    %c0_i32_0 = arith.constant 0 : i32
    return %arg0, %c0_i32 : i32, i32
  }
  func.func @transform_1(%arg0: i32) -> (i32, i32) {
    %c0_i32 = arith.constant 0 : i32
    %c0_i32_0 = arith.constant 0 : i32
    %c0_i32_1 = arith.constant 0 : i32
    return %c0_i32, %c0_i32_0 : i32, i32
  }
  func.func @transform_2(%arg0: i32) -> (i32, i32) {
    %c0_i32 = arith.constant 0 : i32
    %c0_i32_0 = arith.constant 0 : i32
    return %arg0, %c0_i32 : i32, i32
  }
}

</mosaic_0001>

<bundles_post_ra>
// kernel: tpu_custom_call.1
= control target key start
LH: loop header
LB: loop body
LE: loop exit
PB: predicated region body
PF: predicated region fallthrough
CT: control target
= control target key end

     0   :  { %7 = vsyncpa [#allocation3], 0  ;;  %s366_s0 = inlined_call_operand.hbm [shape: f32[8,256], index: 0, kind: input, shape index: {}]   ;;  %s367_s1 = inlined_call_operand.hbm [shape: f32[256,128], index: 1, kind: input, shape index: {}]   ;;  %s368_s2 = inlined_call_operand.hbm [shape: f32[8,128], index: 2, kind: output, shape index: {}]  }
   0x1   :  { %8 = vsyncpa [#allocation6], 0 }
   0x2   :  { %9 = vsyncpa [#allocation4], 0  ;;  %s303_s9 = smov [#allocation2]   ;;  %s304_s11 = smov [#allocation5]  }
   0x3   :  { %s16_s10 = sshll.u32 %s303_s9, 4  ;;  %s25_s12 = sshll.u32 %s304_s11, 4  ;;  %s17_s10 = int_to_ptr.vmem [resolvable:$true] %s16_s10  ;;  %s323_s12 = int_to_ptr.vmem [resolvable:$true] %s25_s12 }
   0x4   :  { %s231_s15 = scalar_lea.hbm %s366_s0, 256 }
   0x5   :  { %p232_p0 = scmp.ne.s32.totalorder %s366_s0, %s231_s15  ;;  %p235_p1 = scmp.lt.u32.totalorder %s231_s15, %s366_s0 }
   0x7   :  { %p237_p2 = pnand %p235_p1, %p232_p0 }
   0x9   :  { %240 = shalt.err (!%p237_p2)
}
   0xa   :  { %s241_s20 = scalar_lea.vmem %s17_s10, 256  ;;  %p246_p4 = scmp.lt.s32.totalorder %s17_s10, %s17_s10 }
   0xb   :  { %p242_p3 = scmp.ne.s32.totalorder %s17_s10, %s241_s20  ;;  %p247_p5 = scmp.lt.s32.totalorder %s241_s20, %s241_s20 }
   0xd   :  { %p248_p6 = por %p247_p5, %p246_p4 }
   0xf   :  { %p249_p7 = pnand %p248_p6, %p242_p3 }
  0x11   :  { %252 = shalt.err (!%p249_p7)
}
  0x12   :  { %19 = dma.hbm_to_vmem [thread:$0]  %s366_s0, 256, %s17_s10, [#allocation3]  }
  0x13   :  { %s253_s25 = scalar_lea.hbm %s367_s1, 4096 }
  0x14   :  { %p254_p8 = scmp.ne.s32.totalorder %s367_s1, %s253_s25  ;;  %p257_p9 = scmp.lt.u32.totalorder %s253_s25, %s367_s1 }
  0x16   :  { %p259_p10 = pnand %p257_p9, %p254_p8 }
  0x18   :  { %262 = shalt.err (!%p259_p10)
}
  0x19   :  { %s263_s30 = scalar_lea.vmem %s323_s12, 4096  ;;  %p268_p12 = scmp.lt.s32.totalorder %s323_s12, %s323_s12 }
  0x1a   :  { %p264_p11 = scmp.ne.s32.totalorder %s323_s12, %s263_s30  ;;  %p269_p13 = scmp.lt.s32.totalorder %s263_s30, %s263_s30 }
  0x1c   :  { %p270_p0 = por %p269_p13, %p268_p12 }
  0x1e   :  { %p271_p1 = pnand %p270_p0, %p264_p11 }
  0x20   :  { %274 = shalt.err (!%p271_p1)
}
  0x21   :  { %s305_s0 = smov 128   ;;  %s306_s3 = smov 8  }
  0x22   :  { %31 = dma.hbm_to_vmem [thread:$0]  %s367_s1, 4096, %s323_s12, [#allocation6], %s305_s0, %s305_s0, %s306_s3  }
  0x23   :  { %297 = dma.done.wait [#allocation3], 256  }
  0x24   :  { %298 = vsyncadd [#allocation3], 4294967040 }
  0x25   :  { %299 = dma.done.wait [#allocation6], 4096  }
  0x26   :  { %300 = vsyncadd [#allocation6], 4294963200  ;;  %v56_v0 = vld [vmem:[#allocation5 + $0x80] sm:$0xff]  ;;  %v57_v1 = vld [vmem:[#allocation5 + $0x88] sm:$0xff]  ;;  %s307_s1 = smov [#allocation7]  }
  0x27   :  { %v40_v2 = vld [vmem:[#allocation5] sm:$0xff]  ;;  %v194_v3 = vpack.c.bf16 %v57_v1, %v56_v0  ;;  %v41_v4 = vld [vmem:[#allocation5 + $0x8] sm:$0xff]  ;;  %v58_v5 = vld [vmem:[#allocation5 + $0x90] sm:$0xff]  ;;  %s149_s6 = sshll.u32 %s307_s1, 4  ;;  %s150_s6 = int_to_ptr.vmem [resolvable:$true] %s149_s6 }
  0x28   :  { %v59_v6 = vld [vmem:[#allocation5 + $0x98] sm:$0xff]  ;;  %v196_v7 = vpack.c.bf16 %v41_v4, %v40_v2  ;;  %v42_v9 = vld [vmem:[#allocation5 + $0x10] sm:$0xff]  ;;  %v60_v11 = vld [vmem:[#allocation5 + $0xa0] sm:$0xff]  ;;  %s275_s7 = scalar_lea.vmem %s150_s6, 128  ;;  %p280_p3 = scmp.lt.s32.totalorder %s150_s6, %s150_s6 }
  0x29   :  { %v198_v8 = vpack.c.bf16 %v59_v6, %v58_v5  ;;  %v43_v10 = vld [vmem:[#allocation5 + $0x18] sm:$0xff]  ;;  %195 = vmatprep.subr.bf16.mxu0 %v194_v3  ;;  %v61_v12 = vld [vmem:[#allocation5 + $0xa8] sm:$0xff]  ;;  %v44_v15 = vld [vmem:[#allocation5 + $0x20] sm:$0xff]  ;;  %p276_p2 = scmp.ne.s32.totalorder %s150_s6, %s275_s7  ;;  %p281_p4 = scmp.lt.s32.totalorder %s275_s7, %s275_s7 }
  0x2a   :  { %197 = vmatpush3.bf16.msra.mxu0 %v196_v7  ;;  %v200_v13 = vpack.c.bf16 %v43_v10, %v42_v9  ;;  %v202_v14 = vpack.c.bf16 %v61_v12, %v60_v11  ;;  %v45_v16 = vld [vmem:[#allocation5 + $0x28] sm:$0xff]  ;;  %v62_v17 = vld [vmem:[#allocation5 + $0xb0] sm:$0xff]  ;;  %v63_v18 = vld [vmem:[#allocation5 + $0xb8] sm:$0xff] }
  0x2b   :  { %199 = vmatprep.subr.bf16.mxu0 %v198_v8  ;;  %v204_v19 = vpack.c.bf16 %v45_v16, %v44_v15  ;;  %v206_v20 = vpack.c.bf16 %v63_v18, %v62_v17  ;;  %v46_v21 = vld [vmem:[#allocation5 + $0x30] sm:$0xff]  ;;  %v47_v22 = vld [vmem:[#allocation5 + $0x38] sm:$0xff]  ;;  %v64_v23 = vld [vmem:[#allocation5 + $0xc0] sm:$0xff]  ;;  %p282_p5 = por %p281_p4, %p280_p3 }
  0x2c   :  { %v65_v24 = vld [vmem:[#allocation5 + $0xc8] sm:$0xff]  ;;  %v39_v25 = vld [vmem:[#allocation2 + $0x8] sm:$0xff]  ;;  %v208_v26 = vpack.c.bf16 %v47_v22, %v46_v21  ;;  %v48_v28 = vld [vmem:[#allocation5 + $0x40] sm:$0xff] }
  0x2d   :  { %136 = vmatprep.mubr.f32.mxu0 %v39_v25  ;;  %v210_v27 = vpack.c.bf16 %v65_v24, %v64_v23  ;;  %v49_v29 = vld [vmem:[#allocation5 + $0x48] sm:$0xff]  ;;  %v66_v30 = vld [vmem:[#allocation5 + $0xd0] sm:$0xff]  ;;  %v67_v31 = vld [vmem:[#allocation5 + $0xd8] sm:$0xff]  ;;  %p283_p6 = pnand %p282_p5, %p276_p2 }
  0x2e   :  { %201 = vmatpush3.bf16.msra.mxu0 %v200_v13  ;;  %v212_v32 = vpack.c.bf16 %v49_v29, %v48_v28  ;;  %v214_v33 = vpack.c.bf16 %v67_v31, %v66_v30  ;;  %v50_v34 = vld [vmem:[#allocation5 + $0x50] sm:$0xff]  ;;  %v51_v35 = vld [vmem:[#allocation5 + $0x58] sm:$0xff]  ;;  %v68_v36 = vld [vmem:[#allocation5 + $0xe0] sm:$0xff] }
  0x2f   :  { %203 = vmatprep.subr.bf16.mxu0 %v202_v14  ;;  %v69_v37 = vld [vmem:[#allocation5 + $0xe8] sm:$0xff]  ;;  %v216_v38 = vpack.c.bf16 %v51_v35, %v50_v34  ;;  %v52_v40 = vld [vmem:[#allocation5 + $0x60] sm:$0xff]  ;;  %v70_v42 = vld [vmem:[#allocation5 + $0xf0] sm:$0xff] }
  0x30   :  { %v218_v39 = vpack.c.bf16 %v69_v37, %v68_v36  ;;  %v53_v41 = vld [vmem:[#allocation5 + $0x68] sm:$0xff]  ;;  %v71_v43 = vld [vmem:[#allocation5 + $0xf8] sm:$0xff]  ;;  %v54_v46 = vld [vmem:[#allocation5 + $0x70] sm:$0xff] }
  0x31   :  { %v220_v44 = vpack.c.bf16 %v53_v41, %v52_v40  ;;  %v222_v45 = vpack.c.bf16 %v71_v43, %v70_v42  ;;  %v55_v47 = vld [vmem:[#allocation5 + $0x78] sm:$0xff]  ;;  %v38_v49 = vld [vmem:[#allocation2] sm:$0xff] }
  0x32   :  { %205 = vmatpush3.bf16.msra.mxu0 %v204_v19  ;;  %v224_v48 = vpack.c.bf16 %v55_v47, %v54_v46 }
  0x33   :  { %207 = vmatprep.subr.bf16.mxu0 %v206_v20 }
  0x36   :  { %209 = vmatpush3.bf16.msra.mxu0 %v208_v26 }
  0x37   :  { %211 = vmatprep.subr.bf16.mxu0 %v210_v27 }
  0x3a   :  { %213 = vmatpush3.bf16.msra.mxu0 %v212_v32 }
  0x3b   :  { %215 = vmatprep.subr.bf16.mxu0 %v214_v33 }
  0x3e   :  { %217 = vmatpush3.bf16.msra.mxu0 %v216_v38 }
  0x3f   :  { %219 = vmatprep.subr.bf16.mxu0 %v218_v39 }
  0x42   :  { %221 = vmatpush3.bf16.msra.mxu0 %v220_v44 }
  0x43   :  { %223 = vmatprep.subr.bf16.mxu0 %v222_v45 }
  0x46   :  { %225 = vmatpush3.bf16.msra.mxu0 %v224_v48 }
  0x49   :  { %137 = vmatmul.mubr.f32.vlgmr.msra.gmra.mrb[0].mxu0 %v38_v49 }
 0x11c   :  { %v191_v50 = vpop.f32.mrb[0].mxu0 }
 0x11d   :  { %v192_v51 = vpop.f32.mrb[1].mxu0 }
 0x11e   :  { %v193_v52 = vadd.f32 %v192_v51, %v191_v50 }
 0x120   :  { %142 = vst [vmem:[#allocation7] sm:$0xff] %v193_v52 }
 0x121   :  { %286 = shalt.err (!%p283_p6)
}
 0x122   :  { %s287_s10 = scalar_lea.hbm %s368_s2, 128 }
 0x123   :  { %p288_p7 = scmp.ne.s32.totalorder %s368_s2, %s287_s10  ;;  %p291_p8 = scmp.lt.u32.totalorder %s287_s10, %s368_s2 }
 0x125   :  { %p293_p9 = pnand %p291_p8, %p288_p7 }
 0x127   :  { %296 = shalt.err (!%p293_p9)
}
 0x128   :  { %152 = dma.vmem_to_hbm [thread:$0]  %s150_s6, 128, %s368_s2, [#allocation4]  }
 0x129   :  { %301 = dma.done.wait [#allocation4], 128  }
 0x12a   :  { %302 = vsyncadd [#allocation4], 4294967168 }
 0x12b   :  { %156 = vsyncpa [#allocation3], 1 }
 0x12c   :  { %157 = vsyncpa [#allocation6], 1 }
 0x12d   :  { %158 = vsyncpa [#allocation4], 1 }

// kernel: tpu_custom_call.1
= control target key start
LH: loop header
LB: loop body
LE: loop exit
PB: predicated region body
PF: predicated region fallthrough
CT: control target
= control target key end

     0   :  { %7 = vsyncpa [#allocation3], 0  ;;  %s366_s0 = inlined_call_operand.hbm [shape: f32[8,256], index: 0, kind: input, shape index: {}]   ;;  %s367_s1 = inlined_call_operand.hbm [shape: f32[256,128], index: 1, kind: input, shape index: {}]   ;;  %s368_s2 = inlined_call_operand.hbm [shape: f32[8,128], index: 2, kind: output, shape index: {}]  }
   0x1   :  { %8 = vsyncpa [#allocation6], 0 }
   0x2   :  { %9 = vsyncpa [#allocation4], 0  ;;  %s303_s9 = smov [#allocation2]   ;;  %s304_s11 = smov [#allocation5]  }
   0x3   :  { %s16_s10 = sshll.u32 %s303_s9, 4  ;;  %s25_s12 = sshll.u32 %s304_s11, 4  ;;  %s17_s10 = int_to_ptr.vmem [resolvable:$true] %s16_s10  ;;  %s323_s12 = int_to_ptr.vmem [resolvable:$true] %s25_s12 }
   0x4   :  { %s231_s15 = scalar_lea.hbm %s366_s0, 256 }
   0x5   :  { %p232_p0 = scmp.ne.s32.totalorder %s366_s0, %s231_s15  ;;  %p235_p1 = scmp.lt.u32.totalorder %s231_s15, %s366_s0 }
   0x7   :  { %p237_p2 = pnand %p235_p1, %p232_p0 }
   0x9   :  { %240 = shalt.err (!%p237_p2)
}
   0xa   :  { %s241_s20 = scalar_lea.vmem %s17_s10, 256  ;;  %p246_p4 = scmp.lt.s32.totalorder %s17_s10, %s17_s10 }
   0xb   :  { %p242_p3 = scmp.ne.s32.totalorder %s17_s10, %s241_s20  ;;  %p247_p5 = scmp.lt.s32.totalorder %s241_s20, %s241_s20 }
   0xd   :  { %p248_p6 = por %p247_p5, %p246_p4 }
   0xf   :  { %p249_p7 = pnand %p248_p6, %p242_p3 }
  0x11   :  { %252 = shalt.err (!%p249_p7)
}
  0x12   :  { %19 = dma.hbm_to_vmem [thread:$0]  %s366_s0, 256, %s17_s10, [#allocation3]  }
  0x13   :  { %s253_s25 = scalar_lea.hbm %s367_s1, 4096 }
  0x14   :  { %p254_p8 = scmp.ne.s32.totalorder %s367_s1, %s253_s25  ;;  %p257_p9 = scmp.lt.u32.totalorder %s253_s25, %s367_s1 }
  0x16   :  { %p259_p10 = pnand %p257_p9, %p254_p8 }
  0x18   :  { %262 = shalt.err (!%p259_p10)
}
  0x19   :  { %s263_s30 = scalar_lea.vmem %s323_s12, 4096  ;;  %p268_p12 = scmp.lt.s32.totalorder %s323_s12, %s323_s12 }
  0x1a   :  { %p264_p11 = scmp.ne.s32.totalorder %s323_s12, %s263_s30  ;;  %p269_p13 = scmp.lt.s32.totalorder %s263_s30, %s263_s30 }
  0x1c   :  { %p270_p0 = por %p269_p13, %p268_p12 }
  0x1e   :  { %p271_p1 = pnand %p270_p0, %p264_p11 }
  0x20   :  { %274 = shalt.err (!%p271_p1)
}
  0x21   :  { %s305_s0 = smov 128   ;;  %s306_s3 = smov 8  }
  0x22   :  { %31 = dma.hbm_to_vmem [thread:$0]  %s367_s1, 4096, %s323_s12, [#allocation6], %s305_s0, %s305_s0, %s306_s3  }
  0x23   :  { %297 = dma.done.wait [#allocation3], 256  }
  0x24   :  { %298 = vsyncadd [#allocation3], 4294967040 }
  0x25   :  { %299 = dma.done.wait [#allocation6], 4096  }
  0x26   :  { %300 = vsyncadd [#allocation6], 4294963200  ;;  %v56_v0 = vld [vmem:[#allocation5 + $0x80] sm:$0xff]  ;;  %v57_v1 = vld [vmem:[#allocation5 + $0x88] sm:$0xff]  ;;  %s307_s1 = smov [#allocation7]  }
  0x27   :  { %v40_v2 = vld [vmem:[#allocation5] sm:$0xff]  ;;  %v194_v3 = vpack.c.bf16 %v57_v1, %v56_v0  ;;  %v41_v4 = vld [vmem:[#allocation5 + $0x8] sm:$0xff]  ;;  %v58_v5 = vld [vmem:[#allocation5 + $0x90] sm:$0xff]  ;;  %s149_s6 = sshll.u32 %s307_s1, 4  ;;  %s150_s6 = int_to_ptr.vmem [resolvable:$true] %s149_s6 }
  0x28   :  { %v59_v6 = vld [vmem:[#allocation5 + $0x98] sm:$0xff]  ;;  %v196_v7 = vpack.c.bf16 %v41_v4, %v40_v2  ;;  %v42_v9 = vld [vmem:[#allocation5 + $0x10] sm:$0xff]  ;;  %v60_v11 = vld [vmem:[#allocation5 + $0xa0] sm:$0xff]  ;;  %s275_s7 = scalar_lea.vmem %s150_s6, 128  ;;  %p280_p3 = scmp.lt.s32.totalorder %s150_s6, %s150_s6 }
  0x29   :  { %v198_v8 = vpack.c.bf16 %v59_v6, %v58_v5  ;;  %v43_v10 = vld [vmem:[#allocation5 + $0x18] sm:$0xff]  ;;  %195 = vmatprep.subr.bf16.mxu0 %v194_v3  ;;  %v61_v12 = vld [vmem:[#allocation5 + $0xa8] sm:$0xff]  ;;  %v44_v15 = vld [vmem:[#allocation5 + $0x20] sm:$0xff]  ;;  %p276_p2 = scmp.ne.s32.totalorder %s150_s6, %s275_s7  ;;  %p281_p4 = scmp.lt.s32.totalorder %s275_s7, %s275_s7 }
  0x2a   :  { %197 = vmatpush3.bf16.msra.mxu0 %v196_v7  ;;  %v200_v13 = vpack.c.bf16 %v43_v10, %v42_v9  ;;  %v202_v14 = vpack.c.bf16 %v61_v12, %v60_v11  ;;  %v45_v16 = vld [vmem:[#allocation5 + $0x28] sm:$0xff]  ;;  %v62_v17 = vld [vmem:[#allocation5 + $0xb0] sm:$0xff]  ;;  %v63_v18 = vld [vmem:[#allocation5 + $0xb8] sm:$0xff] }
  0x2b   :  { %199 = vmatprep.subr.bf16.mxu0 %v198_v8  ;;  %v204_v19 = vpack.c.bf16 %v45_v16, %v44_v15  ;;  %v206_v20 = vpack.c.bf16 %v63_v18, %v62_v17  ;;  %v46_v21 = vld [vmem:[#allocation5 + $0x30] sm:$0xff]  ;;  %v47_v22 = vld [vmem:[#allocation5 + $0x38] sm:$0xff]  ;;  %v64_v23 = vld [vmem:[#allocation5 + $0xc0] sm:$0xff]  ;;  %p282_p5 = por %p281_p4, %p280_p3 }
  0x2c   :  { %v65_v24 = vld [vmem:[#allocation5 + $0xc8] sm:$0xff]  ;;  %v39_v25 = vld [vmem:[#allocation2 + $0x8] sm:$0xff]  ;;  %v208_v26 = vpack.c.bf16 %v47_v22, %v46_v21  ;;  %v48_v28 = vld [vmem:[#allocation5 + $0x40] sm:$0xff] }
  0x2d   :  { %136 = vmatprep.mubr.f32.mxu0 %v39_v25  ;;  %v210_v27 = vpack.c.bf16 %v65_v24, %v64_v23  ;;  %v49_v29 = vld [vmem:[#allocation5 + $0x48] sm:$0xff]  ;;  %v66_v30 = vld [vmem:[#allocation5 + $0xd0] sm:$0xff]  ;;  %v67_v31 = vld [vmem:[#allocation5 + $0xd8] sm:$0xff]  ;;  %p283_p6 = pnand %p282_p5, %p276_p2 }
  0x2e   :  { %201 = vmatpush3.bf16.msra.mxu0 %v200_v13  ;;  %v212_v32 = vpack.c.bf16 %v49_v29, %v48_v28  ;;  %v214_v33 = vpack.c.bf16 %v67_v31, %v66_v30  ;;  %v50_v34 = vld [vmem:[#allocation5 + $0x50] sm:$0xff]  ;;  %v51_v35 = vld [vmem:[#allocation5 + $0x58] sm:$0xff]  ;;  %v68_v36 = vld [vmem:[#allocation5 + $0xe0] sm:$0xff] }
  0x2f   :  { %203 = vmatprep.subr.bf16.mxu0 %v202_v14  ;;  %v69_v37 = vld [vmem:[#allocation5 + $0xe8] sm:$0xff]  ;;  %v216_v38 = vpack.c.bf16 %v51_v35, %v50_v34  ;;  %v52_v40 = vld [vmem:[#allocation5 + $0x60] sm:$0xff]  ;;  %v70_v42 = vld [vmem:[#allocation5 + $0xf0] sm:$0xff] }
  0x30   :  { %v218_v39 = vpack.c.bf16 %v69_v37, %v68_v36  ;;  %v53_v41 = vld [vmem:[#allocation5 + $0x68] sm:$0xff]  ;;  %v71_v43 = vld [vmem:[#allocation5 + $0xf8] sm:$0xff]  ;;  %v54_v46 = vld [vmem:[#allocation5 + $0x70] sm:$0xff] }
  0x31   :  { %v220_v44 = vpack.c.bf16 %v53_v41, %v52_v40  ;;  %v222_v45 = vpack.c.bf16 %v71_v43, %v70_v42  ;;  %v55_v47 = vld [vmem:[#allocation5 + $0x78] sm:$0xff]  ;;  %v38_v49 = vld [vmem:[#allocation2] sm:$0xff] }
  0x32   :  { %205 = vmatpush3.bf16.msra.mxu0 %v204_v19  ;;  %v224_v48 = vpack.c.bf16 %v55_v47, %v54_v46 }
  0x33   :  { %207 = vmatprep.subr.bf16.mxu0 %v206_v20 }
  0x36   :  { %209 = vmatpush3.bf16.msra.mxu0 %v208_v26 }
  0x37   :  { %211 = vmatprep.subr.bf16.mxu0 %v210_v27 }
  0x3a   :  { %213 = vmatpush3.bf16.msra.mxu0 %v212_v32 }
  0x3b   :  { %215 = vmatprep.subr.bf16.mxu0 %v214_v33 }
  0x3e   :  { %217 = vmatpush3.bf16.msra.mxu0 %v216_v38 }
  0x3f   :  { %219 = vmatprep.subr.bf16.mxu0 %v218_v39 }
  0x42   :  { %221 = vmatpush3.bf16.msra.mxu0 %v220_v44 }
  0x43   :  { %223 = vmatprep.subr.bf16.mxu0 %v222_v45 }
  0x46   :  { %225 = vmatpush3.bf16.msra.mxu0 %v224_v48 }
  0x49   :  { %137 = vmatmul.mubr.f32.vlgmr.msra.gmra.mrb[0].mxu0 %v38_v49 }
 0x11c   :  { %v191_v50 = vpop.f32.mrb[0].mxu0 }
 0x11d   :  { %v192_v51 = vpop.f32.mrb[1].mxu0 }
 0x11e   :  { %v193_v52 = vadd.f32 %v192_v51, %v191_v50 }
 0x120   :  { %142 = vst [vmem:[#allocation7] sm:$0xff] %v193_v52 }
 0x121   :  { %286 = shalt.err (!%p283_p6)
}
 0x122   :  { %s287_s10 = scalar_lea.hbm %s368_s2, 128 }
 0x123   :  { %p288_p7 = scmp.ne.s32.totalorder %s368_s2, %s287_s10  ;;  %p291_p8 = scmp.lt.u32.totalorder %s287_s10, %s368_s2 }
 0x125   :  { %p293_p9 = pnand %p291_p8, %p288_p7 }
 0x127   :  { %296 = shalt.err (!%p293_p9)
}
 0x128   :  { %152 = dma.vmem_to_hbm [thread:$0]  %s150_s6, 128, %s368_s2, [#allocation4]  }
 0x129   :  { %301 = dma.done.wait [#allocation4], 128  }
 0x12a   :  { %302 = vsyncadd [#allocation4], 4294967168 }
 0x12b   :  { %156 = vsyncpa [#allocation3], 1 }
 0x12c   :  { %157 = vsyncpa [#allocation6], 1 }
 0x12d   :  { %158 = vsyncpa [#allocation4], 1 }

</bundles_post_ra>
